<compile_context>
chip_gen: v7x
topology: tpu7x:2x2x1
jax: 0.10.0
libtpu: 0.0.40
codegen_flags: <defaults>
</compile_context>

<pallas_src>
import functools

import jax
import jax.numpy as jnp
import numpy as np
from jax.experimental import pallas as pl
from jax.experimental.pallas import tpu as pltpu


EPS = 1e-5
EXPANSION = 4
LANE = 128
ROW_ALIGN = 16          # bf16 sublane packing: keep row offsets multiples of 16


def _round_up(v, m):
    return ((v + m - 1) // m) * m


@functools.lru_cache(maxsize=None)
def _roll_matches_jnp():
    """One-time probe: does pltpu.roll follow the jnp.roll sign convention?"""
    def k(x_ref, o_ref):
        o_ref[...] = pltpu.roll(x_ref[...], shift=1, axis=0)

    x = jnp.arange(8 * LANE, dtype=jnp.float32).reshape(8, LANE)
    got = pl.pallas_call(
        k, out_shape=jax.ShapeDtypeStruct((8, LANE), jnp.float32))(x)
    return bool(jnp.array_equal(got, jnp.roll(x, 1, axis=0)))


# --------------------------------------------------------------------------- #
# Parameter construction (PyTorch-like init) + BN folding + MXU packing
# --------------------------------------------------------------------------- #
def init_raw_params(key, in_channels, out_channels):
    cm = out_channels
    cout = out_channels * EXPANSION
    ks = list(jax.random.split(key, 18))

    def conv_w(k, co, ci, kh, kw):
        bound = 1.0 / np.sqrt(ci * kh * kw)
        return jax.random.uniform(k, (co, ci, kh, kw), jnp.float32, -bound, bound)

    def conv_b(k, co, ci, kh, kw):
        bound = 1.0 / np.sqrt(ci * kh * kw)
        return jax.random.uniform(k, (co,), jnp.float32, -bound, bound)

    def bn_params(k0, k1, k2, k3, c):
        gamma = jax.random.uniform(k0, (c,), jnp.float32, 0.8, 1.2)
        beta = jax.random.uniform(k1, (c,), jnp.float32, -0.1, 0.1)
        mean = 0.1 * jax.random.normal(k2, (c,), jnp.float32)
        var = jax.random.uniform(k3, (c,), jnp.float32, 0.5, 1.5)
        return gamma, beta, mean, var

    return {
        "w1": conv_w(ks[0], cm, in_channels, 1, 1),
        "b1": conv_b(ks[1], cm, in_channels, 1, 1),
        "bn1": bn_params(ks[2], ks[3], ks[4], ks[5], cm),
        "w2": conv_w(ks[6], cm, cm, 3, 3),
        "b2": conv_b(ks[7], cm, cm, 3, 3),
        "bn2": bn_params(ks[8], ks[9], ks[10], ks[11], cm),
        "w3": conv_w(ks[12], cout, cm, 1, 1),
        "b3": conv_b(ks[13], cout, cm, 1, 1),
        "bn3": bn_params(ks[14], ks[15], ks[16], ks[17], cout),
    }


def prepare_kernel_params(raw):
    cm, cin = raw["w1"].shape[0], raw["w1"].shape[1]
    cout = raw["w3"].shape[0]
    cin_p = _round_up(cin, LANE)
    cm_p = _round_up(cm, LANE)
    cout_p = _round_up(cout, LANE)

    def pad2(a, r, c):
        return jnp.pad(a, ((0, r - a.shape[0]), (0, c - a.shape[1])))

    p = {"cin": cin, "cm": cm, "cout": cout,
         "cin_p": cin_p, "cm_p": cm_p, "cout_p": cout_p}

    # conv1: (Cm, Cin, 1, 1) -> (Cin_p, Cm_p) bf16
    w1 = jnp.transpose(raw["w1"][:, :, 0, 0], (1, 0))
    p["w1"] = pad2(w1, cin_p, cm_p).astype(jnp.bfloat16)

    # conv2: OIHW -> (kh, kw, Ci, Co), pad channels, then stack the three kw
    # taps along K in lane-block order [kw=1 (dx=0), kw=0 (dx=-1), kw=2 (dx=+1)]
    # to match the staged [y1 | y1 shifted by -1 | y1 shifted by +1] lane
    # blocks: one aligned K = 3*Cm_p matmul per kh (dy) value.
    w2 = jnp.transpose(raw["w2"], (2, 3, 1, 0))
    w2 = jnp.pad(w2, ((0, 0), (0, 0), (0, cm_p - cm), (0, cm_p - cm)))
    p["w2k"] = jnp.stack(
        [jnp.concatenate([w2[kh, 1], w2[kh, 0], w2[kh, 2]], axis=0)
         for kh in range(3)], axis=0).astype(jnp.bfloat16)      # (3, 3*Cm_p, Cm_p)

    # conv3: (Cout, Cm, 1, 1) -> (Cm_p, Cout_p) bf16
    w3 = jnp.transpose(raw["w3"][:, :, 0, 0], (1, 0))
    p["w3"] = pad2(w3, cm_p, cout_p).astype(jnp.bfloat16)

    def fold_pad(bn, bias, cp):
        g, be, m, v = bn
        scale = g / jnp.sqrt(v + EPS)
        shift = be + (bias - m) * scale
        scale = jnp.pad(scale, (0, cp - scale.shape[0]))        # padded channels -> 0
        shift = jnp.pad(shift, (0, cp - shift.shape[0]))
        return scale.reshape(1, cp), shift.reshape(1, cp)

    p["s1"], p["b1"] = fold_pad(raw["bn1"], raw["b1"], cm_p)
    p["s2"], p["b2"] = fold_pad(raw["bn2"], raw["b2"], cm_p)
    p["s3"], p["b3"] = fold_pad(raw["bn3"], raw["b3"], cout_p)
    return p


# --------------------------------------------------------------------------- #
# Fused Bottleneck forward (single Pallas kernel, grid over the batch)
# --------------------------------------------------------------------------- #
def _make_kernel(M, wp_p, cm_p, s_up, s_dn):
    def kernel(x_ref, mask_ref, w1_ref, w2k_ref, w3_ref,
               s1_ref, b1_ref, s2_ref, b2_ref, s3_ref, b3_ref,
               o_ref, y1s_ref, acc_ref):
        # Top / bottom halo rows of the staging scratch model the 3x3 conv's
        # zero row-padding.  They are only 2*wp_p rows, so zero them every
        # step: negligible cost and no cross-iteration scratch state (safe if
        # the parallel batch axis is split across TensorCores).
        zero_halo = jnp.zeros((wp_p, 3 * cm_p), jnp.bfloat16)
        y1s_ref[0:wp_p, :] = zero_halo
        y1s_ref[wp_p + M:2 * wp_p + M, :] = zero_halo

        # ---- conv1 (1x1) + BN1 + ReLU ------------------------------------- #
        x = x_ref[...]                                       # (M, Cin_p) bf16
        y1 = jnp.dot(x, w1_ref[...], preferred_element_type=jnp.float32)
        y1 = jnp.maximum(y1 * s1_ref[...] + b1_ref[...], 0.0)
        y1 = y1 * mask_ref[...]           # zero the left/right pad columns

        # Stage y1 plus its +-1 column-shifted copies (pure sublane rolls on
        # the XLU; the wrap rows land on masked pad columns, i.e. zeros), each
        # in its own 128-lane block, all at 16-aligned row offsets.
        y1s_ref[wp_p:wp_p + M, 0:cm_p] = y1.astype(jnp.bfloat16)
        up = pltpu.roll(y1, shift=s_up, axis=0)              # up[m] = y1[m-1]
        y1s_ref[wp_p:wp_p + M, cm_p:2 * cm_p] = up.astype(jnp.bfloat16)
        dn = pltpu.roll(y1, shift=s_dn, axis=0)              # dn[m] = y1[m+1]
        y1s_ref[wp_p:wp_p + M, 2 * cm_p:3 * cm_p] = dn.astype(jnp.bfloat16)

        # ---- conv2 (3x3, pad=1): 3 aligned K = 3*Cm_p matmuls -------------- #
        for dyi in range(3):                                 # dy = dyi - 1
            off = dyi * wp_p                                 # 16-aligned window
            d = jnp.dot(y1s_ref[off:off + M, :], w2k_ref[dyi],
                        preferred_element_type=jnp.float32)
            if dyi == 0:
                acc_ref[...] = d
            else:
                acc_ref[...] += d
        y2 = jnp.maximum(acc_ref[...] * s2_ref[...] + b2_ref[...], 0.0)

        # ---- conv3 (1x1) + BN3 + residual + ReLU --------------------------- #
        y3 = jnp.dot(y2.astype(jnp.bfloat16), w3_ref[...],
                     preferred_element_type=jnp.float32)
        out = y3 * s3_ref[...] + b3_ref[...] + x_ref[...].astype(jnp.float32)
        o_ref[...] = jnp.maximum(out, 0.0).astype(o_ref.dtype)

    return kernel


def bottleneck_forward(x_nchw, p):
    n, cin, h, w = x_nchw.shape
    cin_p, cm_p, cout_p = p["cin_p"], p["cm_p"], p["cout_p"]
    cout = p["cout"]
    if cin != p["cin"]:
        raise ValueError("input channel count does not match the parameters")
    if cout != cin:
        raise ValueError("i_downsample=None requires in_channels == out_channels * expansion")
    # TODO(synk): stride != (1,1) and i_downsample branches not implemented.

    wp_p = _round_up(w + 2, ROW_ALIGN)    # padded row stride: col0 = left pad,
    M = h * wp_p                          # cols 1..w = data, >=1 right pad col
    scratch_rows = M + 2 * wp_p           # + top/bottom halo rows (in VMEM only)

    # NCHW -> NHWC, left/right + channel zero pad, flatten rows.  The 3x3
    # conv's top/bottom zero padding lives only in the kernel's VMEM halo, so
    # no spatial row-ring is materialized in HBM.
    x_nhwc = jnp.transpose(x_nchw, (0, 2, 3, 1))
    x_pad = jnp.pad(x_nhwc, ((0, 0), (0, 0), (1, wp_p - 1 - w), (0, cin_p - cin)))
    x_flat = x_pad.reshape(n, M, cin_p).astype(jnp.bfloat16)

    # Interior-column mask (zero at left/right pad columns of every row).
    col = jnp.arange(wp_p, dtype=jnp.int32)
    colmask = ((col >= 1) & (col <= w)).astype(jnp.float32)
    mask = jnp.tile(colmask, (h,)).reshape(M, 1)

    jnp_roll = _roll_matches_jnp()
    s_up = 1 if jnp_roll else M - 1       # produces up[m] = y1[m-1]
    s_dn = M - 1 if jnp_roll else 1       # produces dn[m] = y1[m+1]

    kernel = _make_kernel(M, wp_p, cm_p, s_up, s_dn)

    # Honest (unpadded) cost hint for the XLA scheduler.
    cin_u, cm_u, cout_u = p["cin"], p["cm"], cout
    flops = 2 * n * h * w * (cin_u * cm_u + 9 * cm_u * cm_u + cm_u * cout_u)
    bytes_accessed = (x_flat.size * 2 + n * M * cout_p * 2
                      + (p["w1"].size + p["w2k"].size + p["w3"].size) * 2)

    # Per-step VMEM budget: double-buffered in/out blocks + weights + scratch
    # + f32 temporaries, with headroom.
    blk = 2 * (M * cin_p * 2 + M * cout_p * 2 + M * 4)
    wts = 2 * ((cin_p * cm_p + 9 * cm_p * cm_p + cm_p * cout_p) * 2
               + (4 * cm_p + 2 * cout_p) * 4)
    scr = scratch_rows * 3 * cm_p * 2 + M * cm_p * 4
    tmp = M * (5 * cm_p + 2 * cout_p + cin_p) * 4
    vmem_limit = int(min(100 * 2 ** 20,
                         max(32 * 2 ** 20, int(1.3 * (blk + wts + scr + tmp)))))

    out_flat = pl.pallas_call(
        kernel,
        out_shape=jax.ShapeDtypeStruct((n, M, cout_p), jnp.bfloat16),
        grid=(n,),
        in_specs=[
            pl.BlockSpec((None, M, cin_p), lambda i: (i, 0, 0)),      # x (per image)
            pl.BlockSpec((M, 1), lambda i: (0, 0)),                   # column mask
            pl.BlockSpec((cin_p, cm_p), lambda i: (0, 0)),            # w1
            pl.BlockSpec((3, 3 * cm_p, cm_p), lambda i: (0, 0, 0)),   # w2 (K-stacked)
            pl.BlockSpec((cm_p, cout_p), lambda i: (0, 0)),           # w3
            pl.BlockSpec((1, cm_p), lambda i: (0, 0)),                # s1
            pl.BlockSpec((1, cm_p), lambda i: (0, 0)),                # b1
            pl.BlockSpec((1, cm_p), lambda i: (0, 0)),                # s2
            pl.BlockSpec((1, cm_p), lambda i: (0, 0)),                # b2
            pl.BlockSpec((1, cout_p), lambda i: (0, 0)),              # s3
            pl.BlockSpec((1, cout_p), lambda i: (0, 0)),              # b3
        ],
        out_specs=pl.BlockSpec((None, M, cout_p), lambda i: (i, 0, 0)),
        scratch_shapes=[
            pltpu.VMEM((scratch_rows, 3 * cm_p), jnp.bfloat16),       # staged y1 taps
            pltpu.VMEM((M, cm_p), jnp.float32),                       # conv2 accumulator
        ],
        compiler_params=pltpu.CompilerParams(
            dimension_semantics=("parallel",),
            vmem_limit_bytes=vmem_limit),
        cost_estimate=pl.CostEstimate(flops=int(flops), transcendentals=0,
                                      bytes_accessed=int(bytes_accessed)),
    )(x_flat, mask, p["w1"], p["w2k"], p["w3"],
      p["s1"], p["b1"], p["s2"], p["b2"], p["s3"], p["b3"])

    out = out_flat.reshape(n, h, wp_p, cout_p)[:, :, 1:w + 1, :cout]
    return jnp.transpose(out, (0, 3, 1, 2)).astype(x_nchw.dtype)      # NCHW


# --------------------------------------------------------------------------- #
# Pure-JAX f32 reference (correctness check)
# --------------------------------------------------------------------------- #
def reference_forward(x_nchw, raw):
    x = jnp.transpose(x_nchw, (0, 2, 3, 1))  # NHWC

    def conv(xx, w_oihw, b, pad):
        w_hwio = jnp.transpose(w_oihw, (2, 3, 1, 0))
        y = jax.lax.conv_general_dilated(
            xx, w_hwio, window_strides=(1, 1),
            padding=[(pad, pad), (pad, pad)],
            dimension_numbers=("NHWC", "HWIO", "NHWC"))
        return y + b.reshape(1, 1, 1, -1)

    def bn(xx, params):
        g, be, m, v = params
        return (xx - m) / jnp.sqrt(v + EPS) * g + be

    identity = x
    y = jax.nn.relu(bn(conv(x, raw["w1"], raw["b1"], 0), raw["bn1"]))
    y = jax.nn.relu(bn(conv(y, raw["w2"], raw["b2"], 1), raw["bn2"]))
    y = bn(conv(y, raw["w3"], raw["b3"], 0), raw["bn3"])
    y = jax.nn.relu(y + identity)
    return jnp.transpose(y, (0, 3, 1, 2))


# --------------------------------------------------------------------------- #
if __name__ == "__main__":
    key = jax.random.PRNGKey(0)
    k_x, k_p = jax.random.split(key)

    # i_downsample=None & stride=(1,1)  =>  in_channels == out_channels * 4
    N, OUT_C, H, W = 2, 4, 16, 16
    IN_C = OUT_C * EXPANSION  # 16

    x = jax.random.normal(k_x, (N, IN_C, H, W), jnp.float32)

    raw = init_raw_params(k_p, IN_C, OUT_C)
    params = prepare_kernel_params(raw)

    out = jax.block_until_ready(bottleneck_forward(x, params))
    ref = jax.block_until_ready(reference_forward(x, raw))

    assert out.shape == (N, IN_C, H, W), out.shape
    # bf16 matmul operands / residual / output (f32 accumulation) => loosened
    # tolerance vs the pure-f32 reference.
    np.testing.assert_allclose(np.asarray(out), np.asarray(ref),
                               rtol=5e-2, atol=5e-2)
    print("KERNEL_OK")
</pallas_src>

<mosaic_0001>
module attributes {stable_mosaic.version = 11 : i64} {
  func.func @k(%arg0: memref<8x128xf32, #tpu.memory_space<vmem>>, %arg1: memref<8x128xf32, #tpu.memory_space<vmem>>) attributes {dimension_semantics = [], scalar_prefetch = 0 : i64, scratch_operands = 0 : i64, tpu.core_type = #tpu.core_type<tc>} {
    %c0 = arith.constant 0 : index
    %c0_0 = arith.constant 0 : index
    %0 = vector.load %arg0[%c0, %c0_0] : memref<8x128xf32, #tpu.memory_space<vmem>>, vector<8x128xf32>
    %c1_i32 = arith.constant 1 : i32
    %1 = tpu.dynamic_rotate %0 by %c1_i32 dim 0 : vector<8x128xf32>, i32 -> vector<8x128xf32>
    %c0_1 = arith.constant 0 : index
    %c0_2 = arith.constant 0 : index
    %2 = vector.load %arg1[%c0_1, %c0_2] : memref<8x128xf32, #tpu.memory_space<vmem>>, vector<8x128xf32>
    tpu.vector_store %arg1[%c0_1, %c0_2], %1 {strides = array<i32>} : memref<8x128xf32, #tpu.memory_space<vmem>>, vector<8x128xf32>,
    return
  }
}

</mosaic_0001>

<bundles_post_ra>
// kernel: tpu_custom_call.1
= control target key start
LH: loop header
LB: loop body
LE: loop exit
PB: predicated region body
PF: predicated region fallthrough
CT: control target
= control target key end

     0   :  { %6 = vsyncpa [#allocation3], 0  ;;  %s125_s0 = inlined_call_operand.hbm [shape: f32[8,128], index: 0, kind: input, shape index: {}]   ;;  %s126_s1 = inlined_call_operand.hbm [shape: f32[8,128], index: 1, kind: output, shape index: {}]  }
   0x1   :  { %7 = vsyncpa [#allocation4], 0  ;;  %s89_s6 = smov [#allocation2]   ;;  %s41_s10 = scalar_lea.hbm %s125_s0, 128 }
   0x2   :  { %s14_s7 = sshll.u32 %s89_s6, 4  ;;  %p42_p0 = scmp.ne.s32.totalorder %s125_s0, %s41_s10  ;;  %s15_s7 = int_to_ptr.vmem [resolvable:$true] %s14_s7 }
   0x3   :  { %p45_p1 = scmp.lt.u32.totalorder %s41_s10, %s125_s0 }
   0x5   :  { %p47_p2 = pnand %p45_p1, %p42_p0 }
   0x7   :  { %50 = shalt.err (!%p47_p2)
}
   0x8   :  { %s51_s15 = scalar_lea.vmem %s15_s7, 128  ;;  %p56_p4 = scmp.lt.s32.totalorder %s15_s7, %s15_s7 }
   0x9   :  { %p52_p3 = scmp.ne.s32.totalorder %s15_s7, %s51_s15  ;;  %p57_p5 = scmp.lt.s32.totalorder %s51_s15, %s51_s15 }
   0xb   :  { %p58_p6 = por %p57_p5, %p56_p4 }
   0xd   :  { %p59_p7 = pnand %p58_p6, %p52_p3 }
   0xf   :  { %62 = shalt.err (!%p59_p7)
}
  0x10   :  { %17 = dma.hbm_to_vmem [thread:$0]  %s125_s0, 128, %s15_s7, [#allocation3]  }
  0x11   :  { %85 = dma.done.wait [#allocation3], 128  }
  0x12   :  { %86 = vsyncadd [#allocation3], 4294967168  ;;  %s90_s18 = smov [#allocation5]   ;;  %v21_v0 = vld [vmem:[#allocation2] sm:$0xff] }
  0x13   :  { %s30_s19 = sshll.u32 %s90_s18, 4  ;;  %v22_v1 = vrot.slane %v21_v0, 7  ;;  %s31_s19 = int_to_ptr.vmem [resolvable:$true] %s30_s19 }
  0x14   :  { %s63_s20 = scalar_lea.vmem %s31_s19, 128  ;;  %p68_p9 = scmp.lt.s32.totalorder %s31_s19, %s31_s19 }
  0x15   :  { %23 = vst [vmem:[#allocation5] sm:$0xff] %v22_v1  ;;  %p64_p8 = scmp.ne.s32.totalorder %s31_s19, %s63_s20  ;;  %p69_p10 = scmp.lt.s32.totalorder %s63_s20, %s63_s20 }
  0x17   :  { %p70_p11 = por %p69_p10, %p68_p9 }
  0x19   :  { %p71_p12 = pnand %p70_p11, %p64_p8 }
  0x1b   :  { %74 = shalt.err (!%p71_p12)
}
  0x1c   :  { %s75_s23 = scalar_lea.hbm %s126_s1, 128 }
  0x1d   :  { %p76_p13 = scmp.ne.s32.totalorder %s126_s1, %s75_s23  ;;  %p79_p0 = scmp.lt.u32.totalorder %s75_s23, %s126_s1 }
  0x1f   :  { %p81_p1 = pnand %p79_p0, %p76_p13 }
  0x21   :  { %84 = shalt.err (!%p81_p1)
}
  0x22   :  { %33 = dma.vmem_to_hbm [thread:$0]  %s31_s19, 128, %s126_s1, [#allocation4]  }
  0x23   :  { %87 = dma.done.wait [#allocation4], 128  }
  0x24   :  { %88 = vsyncadd [#allocation4], 4294967168 }
  0x25   :  { %37 = vsyncpa [#allocation3], 1 }
  0x26   :  { %38 = vsyncpa [#allocation4], 1 }

</bundles_post_ra>
